<compile_context>
chip_gen: v7x
topology: tpu7x:2x2x1
jax: 0.10.0
libtpu: 0.0.40
codegen_flags: <defaults>
</compile_context>

<pallas_src>
import jax
import jax.numpy as jnp
from jax.experimental import pallas as pl
from jax.experimental.pallas import tpu as pltpu

_BN_EPS = 1e-5
_VMEM = pl.BlockSpec(memory_space=pltpu.MemorySpace.VMEM)


# ---------------------------------------------------------------------------
# Fused forward kernel
# ---------------------------------------------------------------------------
def _bn_act(pre, gamma, beta, act):
    """Training-mode BatchNorm1d (batch stats, biased var) + activation."""
    mu = jnp.mean(pre, axis=0, keepdims=True)
    d = pre - mu                                   # reused for var AND normalize
    var = jnp.mean(d * d, axis=0, keepdims=True)   # biased batch variance
    y = gamma * (d * jax.lax.rsqrt(var + _BN_EPS)) + beta
    if act == "relu":
        return jnp.maximum(y, 0.0)
    return jnp.tanh(y)


def _make_vae_kernel(conditional, n_enc, n_dec):
    """Whole VAE forward in one kernel. Ref order:
       x, eps, [c], encoder params, (wm, bm, wv, bv), decoder params,
       then outputs (recon, means, log_var, z).
       Each hidden layer contributes (w,) or (w_x, w_c) plus (gamma, beta)."""

    def kernel(*refs):
        it = iter(refs)
        x = next(it)[...]
        eps = next(it)[...]
        c = next(it)[...] if conditional else None

        # ---------------- Encoder MLP: Linear -> BN -> ReLU ----------------
        h = x
        for i in range(n_enc):
            if i == 0 and conditional:
                wx, wc = next(it), next(it)
                pre = (jnp.dot(h, wx[...], preferred_element_type=jnp.float32)
                       + jnp.dot(c, wc[...], preferred_element_type=jnp.float32))
            else:
                w = next(it)
                pre = jnp.dot(h, w[...], preferred_element_type=jnp.float32)
            g, be = next(it), next(it)
            h = _bn_act(pre, g[...], be[...], "relu")

        # ------------- means / log_var + reparameterize (fused) -------------
        wm, bm, wv, bv = next(it), next(it), next(it), next(it)
        means = jnp.dot(h, wm[...], preferred_element_type=jnp.float32) + bm[...]
        log_var = jnp.dot(h, wv[...], preferred_element_type=jnp.float32) + bv[...]
        z = means + eps * jnp.exp(0.5 * log_var)

        # ----------- Decoder MLP: Linear -> BN -> ReLU (tanh last) ----------
        h = z
        for i in range(n_dec):
            act = "relu" if i + 1 < n_dec else "tanh"
            if i == 0 and conditional:
                wz, wc2 = next(it), next(it)
                pre = (jnp.dot(h, wz[...], preferred_element_type=jnp.float32)
                       + jnp.dot(c, wc2[...], preferred_element_type=jnp.float32))
            else:
                w = next(it)
                pre = jnp.dot(h, w[...], preferred_element_type=jnp.float32)
            g, be = next(it), next(it)
            h = _bn_act(pre, g[...], be[...], act)

        # ------------------------------ Outputs ------------------------------
        recon_ref, means_ref, logv_ref, z_ref = next(it), next(it), next(it), next(it)
        recon_ref[...] = h.astype(recon_ref.dtype)
        means_ref[...] = means.astype(means_ref.dtype)
        logv_ref[...] = log_var.astype(logv_ref.dtype)
        z_ref[...] = z.astype(z_ref.dtype)

    return kernel


# ---------------------------------------------------------------------------
# Parameter construction (mimicking module __init__ shapes / init bounds)
# ---------------------------------------------------------------------------
def _uniform(key, shape, bound):
    return jax.random.uniform(key, shape, jnp.float32, -bound, bound)


class VAEPallas:
    def __init__(self, encoder_layer_sizes, latent_size, decoder_layer_sizes,
                 conditional=False, conditional_size=0, key=None):
        if conditional:
            assert conditional_size > 0
        self.conditional = conditional
        self.latent_size = latent_size
        self.dec_sizes = list(decoder_layer_sizes)
        key = jax.random.PRNGKey(42) if key is None else key

        params = []

        # ----- Encoder MLP -----
        sizes = list(encoder_layer_sizes)
        x_dim = sizes[0]
        if conditional:
            sizes[0] += conditional_size
        self.n_enc = len(sizes) - 1
        for i in range(self.n_enc):
            in_size, out_size = sizes[i], sizes[i + 1]
            key, kw = jax.random.split(key)
            bound = 1.0 / float(in_size) ** 0.5
            w = _uniform(kw, (in_size, out_size), bound)
            # Linear bias dropped: exactly cancelled by batch-stats BatchNorm.
            if i == 0 and conditional:
                params += [w[:x_dim], w[x_dim:]]
            else:
                params += [w]
            params += [jnp.ones((1, out_size), jnp.float32),
                       jnp.zeros((1, out_size), jnp.float32)]

        # ----- means / log_var heads (biases kept: no BN after them) -----
        enc_last = sizes[-1]
        key, km, kbm, kv, kbv = jax.random.split(key, 5)
        bound = 1.0 / float(enc_last) ** 0.5
        params += [_uniform(km, (enc_last, latent_size), bound),
                   _uniform(kbm, (1, latent_size), bound),
                   _uniform(kv, (enc_last, latent_size), bound),
                   _uniform(kbv, (1, latent_size), bound)]

        # ----- Decoder MLP -----
        dec_in = latent_size + (conditional_size if conditional else 0)
        ins = [dec_in] + self.dec_sizes[:-1]
        self.n_dec = len(self.dec_sizes)
        for i, (in_size, out_size) in enumerate(zip(ins, self.dec_sizes)):
            key, kw = jax.random.split(key)
            bound = 1.0 / float(in_size) ** 0.5
            w = _uniform(kw, (in_size, out_size), bound)
            if i == 0 and conditional:
                params += [w[:latent_size], w[latent_size:]]
            else:
                params += [w]
            params += [jnp.ones((1, out_size), jnp.float32),
                       jnp.zeros((1, out_size), jnp.float32)]

        self.params = tuple(params)
        self._kernel = _make_vae_kernel(conditional, self.n_enc, self.n_dec)
        self._forward_jit = jax.jit(self._forward_impl)

    # ---- one fused pallas_call for the whole forward pass ----
    def _forward_impl(self, x, c, eps_key, params):
        n = x.shape[0]
        eps = jax.random.normal(eps_key, (n, self.latent_size), jnp.float32)
        out_shapes = (
            jax.ShapeDtypeStruct((n, self.dec_sizes[-1]), jnp.float32),  # recon_x
            jax.ShapeDtypeStruct((n, self.latent_size), jnp.float32),    # means
            jax.ShapeDtypeStruct((n, self.latent_size), jnp.float32),    # log_var
            jax.ShapeDtypeStruct((n, self.latent_size), jnp.float32),    # z
        )
        inputs = [x, eps] + ([c] if self.conditional else []) + list(params)
        return pl.pallas_call(
            self._kernel,
            out_shape=out_shapes,
            in_specs=[_VMEM] * len(inputs),
            out_specs=(_VMEM, _VMEM, _VMEM, _VMEM),
        )(*inputs)

    def forward(self, x, c=None, eps_key=None):
        return self._forward_jit(x, c, eps_key, self.params)


# ---------------------------------------------------------------------------
# Pure-JAX reference (same param tuple / order) for correctness checking
# ---------------------------------------------------------------------------
def _reference_forward(params, x, c, eps, conditional, n_enc, n_dec):
    def dot(a, b):
        return jnp.dot(a, b, preferred_element_type=jnp.float32,
                       precision=jax.lax.Precision.HIGHEST)

    def bn_act(pre, g, be, act):
        mu = jnp.mean(pre, axis=0, keepdims=True)
        d = pre - mu
        var = jnp.mean(d * d, axis=0, keepdims=True)
        y = g * (d * jax.lax.rsqrt(var + _BN_EPS)) + be
        return jnp.maximum(y, 0.0) if act == "relu" else jnp.tanh(y)

    it = iter(params)
    h = x
    for i in range(n_enc):
        if i == 0 and conditional:
            wx, wc = next(it), next(it)
            pre = dot(h, wx) + dot(c, wc)
        else:
            pre = dot(h, next(it))
        g, be = next(it), next(it)
        h = bn_act(pre, g, be, "relu")
    wm, bm, wv, bv = next(it), next(it), next(it), next(it)
    means = dot(h, wm) + bm
    log_var = dot(h, wv) + bv
    z = means + eps * jnp.exp(0.5 * log_var)
    h = z
    for i in range(n_dec):
        act = "relu" if i + 1 < n_dec else "tanh"
        if i == 0 and conditional:
            wz, wc2 = next(it), next(it)
            pre = dot(h, wz) + dot(c, wc2)
        else:
            pre = dot(h, next(it))
        g, be = next(it), next(it)
        h = bn_act(pre, g, be, act)
    return h, means, log_var, z


# ---------------------------------------------------------------------------
# Main
# ---------------------------------------------------------------------------
if __name__ == "__main__":
    # Small, module-consistent shapes:
    #   encoder_layer_sizes = [32, 64], latent_size = 16,
    #   decoder_layer_sizes = [64, 32], conditional with conditional_size = 8.
    batch = 8
    encoder_layer_sizes = [32, 64]
    decoder_layer_sizes = [64, 32]
    latent_size = 16
    conditional_size = 8

    key = jax.random.PRNGKey(0)
    kx, kc, keps, kparams = jax.random.split(key, 4)
    x = jax.random.normal(kx, (batch, encoder_layer_sizes[0]), jnp.float32)
    c = jax.random.normal(kc, (batch, conditional_size), jnp.float32)

    vae = VAEPallas(encoder_layer_sizes, latent_size, decoder_layer_sizes,
                    conditional=True, conditional_size=conditional_size,
                    key=kparams)

    recon_x, means, log_var, z = vae.forward(x, c, eps_key=keps)
    jax.block_until_ready((recon_x, means, log_var, z))

    # Shape / sanity checks
    assert recon_x.shape == (batch, decoder_layer_sizes[-1])
    assert means.shape == (batch, latent_size)
    assert log_var.shape == (batch, latent_size)
    assert z.shape == (batch, latent_size)

    # Correctness check against a pure-JAX reference using the same eps.
    eps = jax.random.normal(keps, (batch, latent_size), jnp.float32)
    ref = _reference_forward(vae.params, x, c, eps, vae.conditional,
                             vae.n_enc, vae.n_dec)
    for got, want in zip((recon_x, means, log_var, z), ref):
        assert got.shape == want.shape
        assert bool(jnp.all(jnp.isfinite(got)))
        assert bool(jnp.allclose(got, want, atol=1e-3, rtol=1e-3))

    print("KERNEL_OK")
</pallas_src>

<mosaic_0001>
module attributes {stable_mosaic.version = 11 : i64} {
  func.func @kernel(%arg0: memref<8x32xf32, #tpu.memory_space<vmem>>, %arg1: memref<8x16xf32, #tpu.memory_space<vmem>>, %arg2: memref<8x8xf32, #tpu.memory_space<vmem>>, %arg3: memref<32x64xf32, #tpu.memory_space<vmem>>, %arg4: memref<8x64xf32, #tpu.memory_space<vmem>>, %arg5: memref<1x64xf32, #tpu.memory_space<vmem>>, %arg6: memref<1x64xf32, #tpu.memory_space<vmem>>, %arg7: memref<64x16xf32, #tpu.memory_space<vmem>>, %arg8: memref<1x16xf32, #tpu.memory_space<vmem>>, %arg9: memref<64x16xf32, #tpu.memory_space<vmem>>, %arg10: memref<1x16xf32, #tpu.memory_space<vmem>>, %arg11: memref<16x64xf32, #tpu.memory_space<vmem>>, %arg12: memref<8x64xf32, #tpu.memory_space<vmem>>, %arg13: memref<1x64xf32, #tpu.memory_space<vmem>>, %arg14: memref<1x64xf32, #tpu.memory_space<vmem>>, %arg15: memref<64x32xf32, #tpu.memory_space<vmem>>, %arg16: memref<1x32xf32, #tpu.memory_space<vmem>>, %arg17: memref<1x32xf32, #tpu.memory_space<vmem>>, %arg18: memref<8x32xf32, #tpu.memory_space<vmem>>, %arg19: memref<8x16xf32, #tpu.memory_space<vmem>>, %arg20: memref<8x16xf32, #tpu.memory_space<vmem>>, %arg21: memref<8x16xf32, #tpu.memory_space<vmem>>) attributes {dimension_semantics = [], scalar_prefetch = 0 : i64, scratch_operands = 0 : i64, tpu.core_type = #tpu.core_type<tc>} {
    %c0 = arith.constant 0 : index
    %c0_0 = arith.constant 0 : index
    %0 = vector.load %arg0[%c0, %c0_0] : memref<8x32xf32, #tpu.memory_space<vmem>>, vector<8x32xf32>
    %c0_1 = arith.constant 0 : index
    %c0_2 = arith.constant 0 : index
    %1 = vector.load %arg1[%c0_1, %c0_2] : memref<8x16xf32, #tpu.memory_space<vmem>>, vector<8x16xf32>
    %c0_3 = arith.constant 0 : index
    %c0_4 = arith.constant 0 : index
    %2 = vector.load %arg2[%c0_3, %c0_4] : memref<8x8xf32, #tpu.memory_space<vmem>>, vector<8x8xf32>
    %c0_5 = arith.constant 0 : index
    %c0_6 = arith.constant 0 : index
    %3 = vector.load %arg3[%c0_5, %c0_6] : memref<32x64xf32, #tpu.memory_space<vmem>>, vector<32x64xf32>
    %cst = arith.constant dense<0.000000e+00> : vector<8x64xf32>
    %4 = tpu.matmul %0, %3, %cst {dimension_numbers = #tpu.dot_dimension_numbers<[1], [0], [0], [1], [0, 0, 1, 1], [], []>} : vector<8x32xf32>, vector<32x64xf32>, vector<8x64xf32> -> vector<8x64xf32>
    %c0_7 = arith.constant 0 : index
    %c0_8 = arith.constant 0 : index
    %5 = vector.load %arg4[%c0_7, %c0_8] : memref<8x64xf32, #tpu.memory_space<vmem>>, vector<8x64xf32>
    %cst_9 = arith.constant dense<0.000000e+00> : vector<8x64xf32>
    %6 = tpu.matmul %2, %5, %cst_9 {dimension_numbers = #tpu.dot_dimension_numbers<[1], [0], [0], [1], [0, 0, 1, 1], [], []>} : vector<8x8xf32>, vector<8x64xf32>, vector<8x64xf32> -> vector<8x64xf32>
    %7 = arith.addf %4, %6 : vector<8x64xf32>
    %c0_10 = arith.constant 0 : index
    %c0_11 = arith.constant 0 : index
    %8 = vector.load %arg5[%c0_10, %c0_11] : memref<1x64xf32, #tpu.memory_space<vmem>>, vector<1x64xf32>
    %c0_12 = arith.constant 0 : index
    %c0_13 = arith.constant 0 : index
    %9 = vector.load %arg6[%c0_12, %c0_13] : memref<1x64xf32, #tpu.memory_space<vmem>>, vector<1x64xf32>
    %cst_14 = arith.constant dense<0.000000e+00> : vector<64xf32>
    %10 = vector.multi_reduction <add>, %7, %cst_14 [0] : vector<8x64xf32> to vector<64xf32>
    %11 = vector.shape_cast %10 : vector<64xf32> to vector<1x64xf32>
    %cst_15 = arith.constant 8.000000e+00 : f32
    %12 = vector.broadcast %cst_15 : f32 to vector<1x64xf32>
    %13 = arith.divf %11, %12 : vector<1x64xf32>
    %14 = vector.broadcast %13 : vector<1x64xf32> to vector<8x64xf32>
    %15 = arith.subf %7, %14 : vector<8x64xf32>
    %16 = arith.mulf %15, %15 : vector<8x64xf32>
    %cst_16 = arith.constant dense<0.000000e+00> : vector<64xf32>
    %17 = vector.multi_reduction <add>, %16, %cst_16 [0] : vector<8x64xf32> to vector<64xf32>
    %18 = vector.shape_cast %17 : vector<64xf32> to vector<1x64xf32>
    %cst_17 = arith.constant 8.000000e+00 : f32
    %19 = vector.broadcast %cst_17 : f32 to vector<1x64xf32>
    %20 = arith.divf %18, %19 : vector<1x64xf32>
    %cst_18 = arith.constant 9.99999974E-6 : f32
    %21 = vector.broadcast %cst_18 : f32 to vector<1x64xf32>
    %22 = arith.addf %20, %21 : vector<1x64xf32>
    %23 = math.rsqrt %22 : vector<1x64xf32>
    %24 = vector.broadcast %23 : vector<1x64xf32> to vector<8x64xf32>
    %25 = arith.mulf %15, %24 : vector<8x64xf32>
    %26 = vector.broadcast %8 : vector<1x64xf32> to vector<8x64xf32>
    %27 = arith.mulf %26, %25 : vector<8x64xf32>
    %28 = vector.broadcast %9 : vector<1x64xf32> to vector<8x64xf32>
    %29 = arith.addf %27, %28 : vector<8x64xf32>
    %cst_19 = arith.constant 0.000000e+00 : f32
    %30 = vector.broadcast %cst_19 : f32 to vector<8x64xf32>
    %31 = arith.maximumf %29, %30 : vector<8x64xf32>
    %c0_20 = arith.constant 0 : index
    %c0_21 = arith.constant 0 : index
    %32 = vector.load %arg7[%c0_20, %c0_21] : memref<64x16xf32, #tpu.memory_space<vmem>>, vector<64x16xf32>
    %cst_22 = arith.constant dense<0.000000e+00> : vector<8x16xf32>
    %33 = tpu.matmul %31, %32, %cst_22 {dimension_numbers = #tpu.dot_dimension_numbers<[1], [0], [0], [1], [0, 0, 1, 1], [], []>} : vector<8x64xf32>, vector<64x16xf32>, vector<8x16xf32> -> vector<8x16xf32>
    %c0_23 = arith.constant 0 : index
    %c0_24 = arith.constant 0 : index
    %34 = vector.load %arg8[%c0_23, %c0_24] : memref<1x16xf32, #tpu.memory_space<vmem>>, vector<1x16xf32>
    %35 = vector.broadcast %34 : vector<1x16xf32> to vector<8x16xf32>
    %36 = arith.addf %33, %35 : vector<8x16xf32>
    %c0_25 = arith.constant 0 : index
    %c0_26 = arith.constant 0 : index
    %37 = vector.load %arg9[%c0_25, %c0_26] : memref<64x16xf32, #tpu.memory_space<vmem>>, vector<64x16xf32>
    %cst_27 = arith.constant dense<0.000000e+00> : vector<8x16xf32>
    %38 = tpu.matmul %31, %37, %cst_27 {dimension_numbers = #tpu.dot_dimension_numbers<[1], [0], [0], [1], [0, 0, 1, 1], [], []>} : vector<8x64xf32>, vector<64x16xf32>, vector<8x16xf32> -> vector<8x16xf32>
    %c0_28 = arith.constant 0 : index
    %c0_29 = arith.constant 0 : index
    %39 = vector.load %arg10[%c0_28, %c0_29] : memref<1x16xf32, #tpu.memory_space<vmem>>, vector<1x16xf32>
    %40 = vector.broadcast %39 : vector<1x16xf32> to vector<8x16xf32>
    %41 = arith.addf %38, %40 : vector<8x16xf32>
    %cst_30 = arith.constant 5.000000e-01 : f32
    %42 = vector.broadcast %cst_30 : f32 to vector<8x16xf32>
    %43 = arith.mulf %42, %41 : vector<8x16xf32>
    %44 = math.exp %43 : vector<8x16xf32>
    %45 = arith.mulf %1, %44 : vector<8x16xf32>
    %46 = arith.addf %36, %45 : vector<8x16xf32>
    %c0_31 = arith.constant 0 : index
    %c0_32 = arith.constant 0 : index
    %47 = vector.load %arg11[%c0_31, %c0_32] : memref<16x64xf32, #tpu.memory_space<vmem>>, vector<16x64xf32>
    %cst_33 = arith.constant dense<0.000000e+00> : vector<8x64xf32>
    %48 = tpu.matmul %46, %47, %cst_33 {dimension_numbers = #tpu.dot_dimension_numbers<[1], [0], [0], [1], [0, 0, 1, 1], [], []>} : vector<8x16xf32>, vector<16x64xf32>, vector<8x64xf32> -> vector<8x64xf32>
    %c0_34 = arith.constant 0 : index
    %c0_35 = arith.constant 0 : index
    %49 = vector.load %arg12[%c0_34, %c0_35] : memref<8x64xf32, #tpu.memory_space<vmem>>, vector<8x64xf32>
    %cst_36 = arith.constant dense<0.000000e+00> : vector<8x64xf32>
    %50 = tpu.matmul %2, %49, %cst_36 {dimension_numbers = #tpu.dot_dimension_numbers<[1], [0], [0], [1], [0, 0, 1, 1], [], []>} : vector<8x8xf32>, vector<8x64xf32>, vector<8x64xf32> -> vector<8x64xf32>
    %51 = arith.addf %48, %50 : vector<8x64xf32>
    %c0_37 = arith.constant 0 : index
    %c0_38 = arith.constant 0 : index
    %52 = vector.load %arg13[%c0_37, %c0_38] : memref<1x64xf32, #tpu.memory_space<vmem>>, vector<1x64xf32>
    %c0_39 = arith.constant 0 : index
    %c0_40 = arith.constant 0 : index
    %53 = vector.load %arg14[%c0_39, %c0_40] : memref<1x64xf32, #tpu.memory_space<vmem>>, vector<1x64xf32>
    %cst_41 = arith.constant dense<0.000000e+00> : vector<64xf32>
    %54 = vector.multi_reduction <add>, %51, %cst_41 [0] : vector<8x64xf32> to vector<64xf32>
    %55 = vector.shape_cast %54 : vector<64xf32> to vector<1x64xf32>
    %cst_42 = arith.constant 8.000000e+00 : f32
    %56 = vector.broadcast %cst_42 : f32 to vector<1x64xf32>
    %57 = arith.divf %55, %56 : vector<1x64xf32>
    %58 = vector.broadcast %57 : vector<1x64xf32> to vector<8x64xf32>
    %59 = arith.subf %51, %58 : vector<8x64xf32>
    %60 = arith.mulf %59, %59 : vector<8x64xf32>
    %cst_43 = arith.constant dense<0.000000e+00> : vector<64xf32>
    %61 = vector.multi_reduction <add>, %60, %cst_43 [0] : vector<8x64xf32> to vector<64xf32>
    %62 = vector.shape_cast %61 : vector<64xf32> to vector<1x64xf32>
    %cst_44 = arith.constant 8.000000e+00 : f32
    %63 = vector.broadcast %cst_44 : f32 to vector<1x64xf32>
    %64 = arith.divf %62, %63 : vector<1x64xf32>
    %cst_45 = arith.constant 9.99999974E-6 : f32
    %65 = vector.broadcast %cst_45 : f32 to vector<1x64xf32>
    %66 = arith.addf %64, %65 : vector<1x64xf32>
    %67 = math.rsqrt %66 : vector<1x64xf32>
    %68 = vector.broadcast %67 : vector<1x64xf32> to vector<8x64xf32>
    %69 = arith.mulf %59, %68 : vector<8x64xf32>
    %70 = vector.broadcast %52 : vector<1x64xf32> to vector<8x64xf32>
    %71 = arith.mulf %70, %69 : vector<8x64xf32>
    %72 = vector.broadcast %53 : vector<1x64xf32> to vector<8x64xf32>
    %73 = arith.addf %71, %72 : vector<8x64xf32>
    %cst_46 = arith.constant 0.000000e+00 : f32
    %74 = vector.broadcast %cst_46 : f32 to vector<8x64xf32>
    %75 = arith.maximumf %73, %74 : vector<8x64xf32>
    %c0_47 = arith.constant 0 : index
    %c0_48 = arith.constant 0 : index
    %76 = vector.load %arg15[%c0_47, %c0_48] : memref<64x32xf32, #tpu.memory_space<vmem>>, vector<64x32xf32>
    %cst_49 = arith.constant dense<0.000000e+00> : vector<8x32xf32>
    %77 = tpu.matmul %75, %76, %cst_49 {dimension_numbers = #tpu.dot_dimension_numbers<[1], [0], [0], [1], [0, 0, 1, 1], [], []>} : vector<8x64xf32>, vector<64x32xf32>, vector<8x32xf32> -> vector<8x32xf32>
    %c0_50 = arith.constant 0 : index
    %c0_51 = arith.constant 0 : index
    %78 = vector.load %arg16[%c0_50, %c0_51] : memref<1x32xf32, #tpu.memory_space<vmem>>, vector<1x32xf32>
    %c0_52 = arith.constant 0 : index
    %c0_53 = arith.constant 0 : index
    %79 = vector.load %arg17[%c0_52, %c0_53] : memref<1x32xf32, #tpu.memory_space<vmem>>, vector<1x32xf32>
    %cst_54 = arith.constant dense<0.000000e+00> : vector<32xf32>
    %80 = vector.multi_reduction <add>, %77, %cst_54 [0] : vector<8x32xf32> to vector<32xf32>
    %81 = vector.shape_cast %80 : vector<32xf32> to vector<1x32xf32>
    %cst_55 = arith.constant 8.000000e+00 : f32
    %82 = vector.broadcast %cst_55 : f32 to vector<1x32xf32>
    %83 = arith.divf %81, %82 : vector<1x32xf32>
    %84 = vector.broadcast %83 : vector<1x32xf32> to vector<8x32xf32>
    %85 = arith.subf %77, %84 : vector<8x32xf32>
    %86 = arith.mulf %85, %85 : vector<8x32xf32>
    %cst_56 = arith.constant dense<0.000000e+00> : vector<32xf32>
    %87 = vector.multi_reduction <add>, %86, %cst_56 [0] : vector<8x32xf32> to vector<32xf32>
    %88 = vector.shape_cast %87 : vector<32xf32> to vector<1x32xf32>
    %cst_57 = arith.constant 8.000000e+00 : f32
    %89 = vector.broadcast %cst_57 : f32 to vector<1x32xf32>
    %90 = arith.divf %88, %89 : vector<1x32xf32>
    %cst_58 = arith.constant 9.99999974E-6 : f32
    %91 = vector.broadcast %cst_58 : f32 to vector<1x32xf32>
    %92 = arith.addf %90, %91 : vector<1x32xf32>
    %93 = math.rsqrt %92 : vector<1x32xf32>
    %94 = vector.broadcast %93 : vector<1x32xf32> to vector<8x32xf32>
    %95 = arith.mulf %85, %94 : vector<8x32xf32>
    %96 = vector.broadcast %78 : vector<1x32xf32> to vector<8x32xf32>
    %97 = arith.mulf %96, %95 : vector<8x32xf32>
    %98 = vector.broadcast %79 : vector<1x32xf32> to vector<8x32xf32>
    %99 = arith.addf %97, %98 : vector<8x32xf32>
    %100 = math.tanh %99 : vector<8x32xf32>
    %c0_59 = arith.constant 0 : index
    %c0_60 = arith.constant 0 : index
    %101 = vector.load %arg18[%c0_59, %c0_60] : memref<8x32xf32, #tpu.memory_space<vmem>>, vector<8x32xf32>
    tpu.vector_store %arg18[%c0_59, %c0_60], %100 {strides = array<i32>} : memref<8x32xf32, #tpu.memory_space<vmem>>, vector<8x32xf32>,
    %c0_61 = arith.constant 0 : index
    %c0_62 = arith.constant 0 : index
    %102 = vector.load %arg19[%c0_61, %c0_62] : memref<8x16xf32, #tpu.memory_space<vmem>>, vector<8x16xf32>
    tpu.vector_store %arg19[%c0_61, %c0_62], %36 {strides = array<i32>} : memref<8x16xf32, #tpu.memory_space<vmem>>, vector<8x16xf32>,
    %c0_63 = arith.constant 0 : index
    %c0_64 = arith.constant 0 : index
    %103 = vector.load %arg20[%c0_63, %c0_64] : memref<8x16xf32, #tpu.memory_space<vmem>>, vector<8x16xf32>
    tpu.vector_store %arg20[%c0_63, %c0_64], %41 {strides = array<i32>} : memref<8x16xf32, #tpu.memory_space<vmem>>, vector<8x16xf32>,
    %c0_65 = arith.constant 0 : index
    %c0_66 = arith.constant 0 : index
    %104 = vector.load %arg21[%c0_65, %c0_66] : memref<8x16xf32, #tpu.memory_space<vmem>>, vector<8x16xf32>
    tpu.vector_store %arg21[%c0_65, %c0_66], %46 {strides = array<i32>} : memref<8x16xf32, #tpu.memory_space<vmem>>, vector<8x16xf32>,
    return
  }
}

</mosaic_0001>

<bundles_post_ra>
// kernel: _forward_impl.1
= control target key start
LH: loop header
LB: loop body
LE: loop exit
PB: predicated region body
PF: predicated region fallthrough
CT: control target
= control target key end

     0   :  { %s1444_s0 = inlined_call_operand.vmem [shape: f32[8,32], index: 0, kind: input, shape index: {}]   ;;  %s1445_s1 = inlined_call_operand.vmem [shape: f32[8,16], index: 1, kind: input, shape index: {}]   ;;  %s1446_s2 = inlined_call_operand.vmem [shape: f32[8,8], index: 2, kind: input, shape index: {}]   ;;  %s1447_s3 = inlined_call_operand.vmem [shape: f32[32,64], index: 3, kind: input, shape index: {}]   ;;  %s1448_s4 = inlined_call_operand.vmem [shape: f32[8,64], index: 4, kind: input, shape index: {}]   ;;  %s1449_s5 = inlined_call_operand.vmem [shape: f32[1,64], index: 5, kind: input, shape index: {}]   ;;  %s1450_s6 = inlined_call_operand.vmem [shape: f32[1,64], index: 6, kind: input, shape index: {}]   ;;  %s1451_s7 = inlined_call_operand.vmem [shape: f32[64,16], index: 7, kind: input, shape index: {}]   ;;  %s1452_s8 = inlined_call_operand.vmem [shape: f32[1,16], index: 8, kind: input, shape index: {}]   ;;  %s1453_s9 = inlined_call_operand.vmem [shape: f32[64,16], index: 9, kind: input, shape index: {}]   ;;  %s1454_s10 = inlined_call_operand.vmem [shape: f32[1,16], index: 10, kind: input, shape index: {}]   ;;  %s1455_s11 = inlined_call_operand.vmem [shape: f32[16,64], index: 11, kind: input, shape index: {}]   ;;  %s1456_s12 = inlined_call_operand.vmem [shape: f32[8,64], index: 12, kind: input, shape index: {}]   ;;  %s1457_s13 = inlined_call_operand.vmem [shape: f32[1,64], index: 13, kind: input, shape index: {}]   ;;  %s1458_s14 = inlined_call_operand.vmem [shape: f32[1,64], index: 14, kind: input, shape index: {}]   ;;  %s1459_s15 = inlined_call_operand.vmem [shape: f32[64,32], index: 15, kind: input, shape index: {}]   ;;  %s1460_s16 = inlined_call_operand.vmem [shape: f32[1,32], index: 16, kind: input, shape index: {}]   ;;  %s1461_s17 = inlined_call_operand.vmem [shape: f32[1,32], index: 17, kind: input, shape index: {}]   ;;  %s1462_s18 = inlined_call_operand.hbm [shape: f32[8,32], index: 18, kind: output, shape index: {0}]   ;;  %s1463_s19 = inlined_call_operand.hbm [shape: f32[8,16], index: 19, kind: output, shape index: {1}]   ;;  %s1464_s20 = inlined_call_operand.hbm [shape: f32[8,16], index: 20, kind: output, shape index: {2}]   ;;  %s1465_s21 = inlined_call_operand.hbm [shape: f32[8,16], index: 21, kind: output, shape index: {3}]  }
   0x1   :  { %1467 = sst [smem:[#allocation12_spill]] %s1444_s0 }
   0x2   :  { %1468 = sst [smem:[#allocation13_spill]] %s1445_s1 }
   0x3   :  { %1469 = sst [smem:[#allocation14_spill]] %s1446_s2 }
   0x4   :  { %1470 = sst [smem:[#allocation15_spill]] %s1447_s3 }
   0x5   :  { %1471 = sst [smem:[#allocation16_spill]] %s1448_s4 }
   0x6   :  { %1472 = sst [smem:[#allocation17_spill]] %s1449_s5 }
   0x7   :  { %27 = vsyncpa [#allocation3], 0 }
   0x8   :  { %28 = vsyncpa [#allocation5], 0  ;;  %s1473_s26 = sld [smem:[#allocation16_spill]]  ;;  %s1474_s28 = sld [smem:[#allocation14_spill]]  ;;  %vm74_vm0 = vcmask 64512   ;;  %v1102_v2 = vmov 0.0  }
   0x9   :  { %857 = vmatprep.subr.mxu0 %v1102_v2  ;;  %vm1103_vm1 = vmmov 0   ;;  %s1475_s4 = sld [smem:[#allocation15_spill]]  ;;  %v1104_v8 = vmov 0.0|0.0  }
   0xa   :  { %859 = vmatprep.mubr.msk.f32.mxu0 %vm1103_vm1, %v1102_v2  ;;  %948 = vmatprep.subr.bf16.mxu1 %v1104_v8 }
   0xe   :  { %v73_v0 = vld [vmem:[%s1473_s26] sm:$0xff] }
   0xf   :  { %v1225_v1 = vld [vmem:[%s1474_s28] sm:$0xff]  ;;  %v70_v4 = vld [vmem:[%s1475_s4 + $0x8] sm:$0xff]  ;;  %v71_v5 = vld [vmem:[%s1475_s4 + $0x10] sm:$0xff]  ;;  %858 = vmatpush3.msra.mxu0 %v73_v0 }
  0x10   :  { %v69_v3 = vld [vmem:[%s1475_s4] sm:$0xff]  ;;  %v72_v7 = vld [vmem:[%s1475_s4 + $0x18] sm:$0xff] }
  0x11   :  { %v943_v6 = vpack.c.bf16 %v70_v4, %v69_v3 }
  0x12   :  { %29 = vsyncpa [#allocation8], 0  ;;  %860 = vmatmul.mubr.msk.f32.vlgmr.msra.gmra.mrb[0].mxu0 %vm74_vm0, %v1225_v1  ;;  %942 = vmatprep.subr.bf16.mxu0 %v1104_v8  ;;  %v946_v9 = vpack.c.bf16 %v72_v7, %v71_v5  ;;  %s1476_s26 = sld [smem:[#allocation12_spill]]  ;;  %vm148_vm2 = vcmask 261120   ;;  %v262_v11 = vld [vmem:[%s1451_s7] sm:$0xff]  ;;  %v263_v12 = vld [vmem:[%s1451_s7 + $0x8] sm:$0xff] }
  0x13   :  { %944 = vmatpush3.bf16.msra.mxu0 %v943_v6  ;;  %870 = vmatprep.mubr.msk.f32.mxu0 %vm1103_vm1, %v1102_v2  ;;  %v350_v13 = vld [vmem:[%s1453_s9] sm:$0xff]  ;;  %v949_v14 = vpack.c.bf16 %v263_v12, %v262_v11  ;;  %v351_v15 = vld [vmem:[%s1453_s9 + $0x8] sm:$0xff]  ;;  %v264_v17 = vld [vmem:[%s1451_s7 + $0x10] sm:$0xff]  ;;  %vm224_vm3 = vcmask 523264   ;;  %s1477_s28 = sld [smem:[#allocation17_spill]]  ;;  %vm513_vm4 = vcmask 130048  }
  0x14   :  { %945 = vmatprep.subr.bf16.mxu0 %v1104_v8  ;;  %889 = vmatprep.mubr.msk.f32.mxu1 %vm1103_vm1, %v1102_v2  ;;  %v961_v16 = vpack.c.bf16 %v351_v15, %v350_v13  ;;  %v265_v18 = vld [vmem:[%s1451_s7 + $0x18] sm:$0xff]  ;;  %v352_v19 = vld [vmem:[%s1453_s9 + $0x10] sm:$0xff]  ;;  %v266_v23 = vld [vmem:[%s1451_s7 + $0x20] sm:$0xff] }
  0x15   :  { %950 = vmatpush3.bf16.msra.mxu1 %v949_v14  ;;  %v952_v20 = vpack.c.bf16 %v265_v18, %v264_v17  ;;  %v353_v21 = vld [vmem:[%s1453_s9 + $0x18] sm:$0xff]  ;;  %v267_v24 = vld [vmem:[%s1451_s7 + $0x28] sm:$0xff]  ;;  %v354_v25 = vld [vmem:[%s1453_s9 + $0x20] sm:$0xff] }
  0x16   :  { %951 = vmatprep.subr.bf16.mxu1 %v1104_v8  ;;  %v964_v22 = vpack.c.bf16 %v353_v21, %v352_v19  ;;  %v955_v26 = vpack.c.bf16 %v267_v24, %v266_v23  ;;  %v355_v27 = vld [vmem:[%s1453_s9 + $0x28] sm:$0xff]  ;;  %v268_v29 = vld [vmem:[%s1451_s7 + $0x30] sm:$0xff]  ;;  %v269_v30 = vld [vmem:[%s1451_s7 + $0x38] sm:$0xff] }
  0x17   :  { %947 = vmatpush3.bf16.msra.mxu0 %v946_v9  ;;  %v967_v28 = vpack.c.bf16 %v355_v27, %v354_v25  ;;  %v356_v31 = vld [vmem:[%s1453_s9 + $0x30] sm:$0xff]  ;;  %v958_v32 = vpack.c.bf16 %v269_v30, %v268_v29  ;;  %v357_v33 = vld [vmem:[%s1453_s9 + $0x38] sm:$0xff]  ;;  %v806_v59 = vld [vmem:[%s1450_s6] ss:$0 sm:$0xff] }
  0x18   :  { %v66_v10 = vld [vmem:[%s1476_s26] sm:$0xff]  ;;  %960 = vmatprep.subr.bf16.mxu0 %v1104_v8  ;;  %v970_v34 = vpack.c.bf16 %v357_v33, %v356_v31  ;;  %v441_v3 = vld [vmem:[%s1455_s11 + $0x8] sm:$0xff]  ;;  %s1478_s26 = sld [smem:[#allocation13_spill]]  ;;  %v627_v21 = vld [vmem:[%s1459_s15 + $0x10] sm:$0xff] }
  0x19   :  { %953 = vmatpush3.bf16.msra.mxu1 %v952_v20  ;;  %v805_v57 = vld [vmem:[%s1477_s28] ss:$0 sm:$0xff]  ;;  %v626_v19 = vld [vmem:[%s1459_s15 + $0x8] sm:$0xff]  ;;  %v631_v27 = vld [vmem:[%s1459_s15 + $0x30] sm:$0xff] }
  0x1a   :  { %871 = vmatmul.mubr.msk.f32.vlgmr.msra.gmra.mrb[0].mxu0 %vm148_vm2, %v66_v10  ;;  %954 = vmatprep.subr.bf16.mxu1 %v1104_v8  ;;  %v442_v63 = vld [vmem:[%s1456_s12] sm:$0xff]  ;;  %v630_v25 = vld [vmem:[%s1459_s15 + $0x28] sm:$0xff] }
  0x1b   :  { %908 = vmatprep.mubr.msk.f32.mxu0 %vm1103_vm1, %v1102_v2  ;;  %962 = vmatpush3.bf16.msra.mxu0 %v961_v16  ;;  %v440_v0 = vld [vmem:[%s1455_s11] sm:$0xff]  ;;  %s1105_s11 = smov [#allocation4]  }
  0x1c   :  { %963 = vmatprep.subr.bf16.mxu0 %v1104_v8  ;;  %v973_v4 = vpack.c.bf16 %v441_v3, %v440_v0  ;;  %v807_v5 = vld [vmem:[%s1452_s8] ss:$0 sm:$0xff]  ;;  %s764_s25 = sshll.u32 %s1105_s11, 4  ;;  %s765_s25 = int_to_ptr.vmem [resolvable:$true] %s764_s25 }
  0x1d   :  { %956 = vmatpush3.bf16.msra.mxu1 %v955_v26  ;;  %v809_v6 = vld [vmem:[%s1454_s10] ss:$0 sm:$0xff]  ;;  %p1013_p1 = scmp.lt.s32.totalorder %s765_s25, %s765_s25 }
  0x1e   :  { %957 = vmatprep.subr.bf16.mxu1 %v1104_v8  ;;  %v625_v18 = vld [vmem:[%s1459_s15] sm:$0xff] }
  0x1f   :  { %965 = vmatpush3.bf16.msra.mxu0 %v964_v22  ;;  %v976_v20 = vpack.c.bf16 %v626_v19, %v625_v18  ;;  %v628_v22 = vld [vmem:[%s1459_s15 + $0x18] sm:$0xff]  ;;  %v629_v24 = vld [vmem:[%s1459_s15 + $0x20] sm:$0xff] }
  0x20   :  { %966 = vmatprep.subr.bf16.mxu0 %v1104_v8  ;;  %v979_v23 = vpack.c.bf16 %v628_v22, %v627_v21  ;;  %v982_v26 = vpack.c.bf16 %v630_v25, %v629_v24 }
  0x21   :  { %959 = vmatpush3.bf16.msra.mxu1 %v958_v32 }
  0x22   :  { %975 = vmatprep.subr.bf16.mxu1 %v1104_v8 }
  0x23   :  { %968 = vmatpush3.bf16.msra.mxu0 %v967_v28  ;;  %v632_v28 = vld [vmem:[%s1459_s15 + $0x38] sm:$0xff] }
  0x24   :  { %969 = vmatprep.subr.bf16.mxu0 %v1104_v8  ;;  %v985_v29 = vpack.c.bf16 %v632_v28, %v631_v27 }
  0x27   :  { %971 = vmatpush3.bf16.msra.mxu0 %v970_v34 }
  0x28   :  { %911 = vmatprep.subr.mxu0 %v1102_v2 }
  0xed   :  { %v218_v35 = vpop.f32.mrb[0].mxu0 }
  0xee   :  { %v225_v36 = vsel %vm224_vm3, %v218_v35, 0.0  ;;  %v872_v37 = vpop.f32.mrb[1].mxu0 }
  0xef   :  { %v226_v38 = vrot.slane %v225_v36, 4 }
  0xf1   :  { %v227_v39 = vadd.f32 %v226_v38, %v225_v36 }
  0xf3   :  { %v228_v40 = vrot.slane %v227_v39, 2 }
  0xf5   :  { %v229_v41 = vadd.f32 %v228_v40, %v227_v39 }
  0xf7   :  { %v230_v42 = vrot.slane %v229_v41, 1 }
  0xf9   :  { %v231_v43 = vadd.f32 %v230_v42, %v229_v41 }
  0xfb   :  { %v233_v44 = vmul.f32 0.125, %v231_v43 }
  0xfd   :  { %v234_v45 = vsub.f32 %v218_v35, %v233_v44 }
  0xff   :  { %v235_v46 = vmul.f32 %v234_v45, %v234_v45 }
 0x101   :  { %v236_v47 = vsel %vm224_vm3, %v235_v46, 0.0 }
 0x102   :  { %v237_v48 = vrot.slane %v236_v47, 4 }
 0x104   :  { %v238_v49 = vadd.f32 %v237_v48, %v236_v47 }
 0x106   :  { %v239_v50 = vrot.slane %v238_v49, 2 }
 0x108   :  { %v240_v51 = vadd.f32 %v239_v50, %v238_v49 }
 0x10a   :  { %v241_v52 = vrot.slane %v240_v51, 1 }
 0x10c   :  { %v242_v53 = vadd.f32 %v241_v52, %v240_v51  ;;  %v813_v51 = vld [vmem:[%s1457_s13] ss:$0 sm:$0xff] }
 0x10e   :  { %v243_v54 = vmul.f32 0.125, %v242_v53  ;;  %v814_v53 = vld [vmem:[%s1458_s14] ss:$0 sm:$0xff] }
 0x110   :  { %v244_v55 = vadd.f32 1e-05, %v243_v54 }
 0x112   :  { %998 = vrsqrt.f32 %v244_v55 }
 0x11c   :  { %v999_v56 = vpop.eup %998 }
 0x11d   :  { %v246_v58 = vmul.f32 %v999_v56, %v234_v45 }
 0x11f   :  { %v253_v60 = vmul.f32 %v805_v57, %v246_v58 }
 0x121   :  { %v260_v61 = vadd.f32 %v806_v59, %v253_v60 }
 0x123   :  { %v261_v62 = vmax.f32 %v260_v61, 0.0 }
 0x125   :  { %890 = vmatmul.mubr.msk.f32.vlgmr.msra.gmra.mrb[0].mxu1 %vm224_vm3, %v261_v62  ;;  %909 = vmatmul.mubr.msk.f32.vlgmr.msra.gmra.mrb[2].mxu0 %vm224_vm3, %v261_v62 }
 0x126   :  { %913 = vmatprep.mubr.msk.f32.mxu0 %vm1103_vm1, %v1102_v2  ;;  %939 = vmatprep.mubr.msk.f32.mxu1 %vm1103_vm1, %v1102_v2 }
 0x127   :  { %912 = vmatpush3.msra.mxu0 %v442_v63  ;;  %977 = vmatpush3.bf16.msra.mxu1 %v976_v20 }
 0x128   :  { %972 = vmatprep.subr.bf16.mxu0 %v1104_v8  ;;  %978 = vmatprep.subr.bf16.mxu1 %v1104_v8 }
 0x129   :  { %914 = vmatmul.mubr.msk.f32.vlgmr.msra.gmra.mrb[4].mxu0 %vm74_vm0, %v1225_v1 }
 0x12a   :  { %974 = vmatpush3.bf16.msra.mxu0 %v973_v4  ;;  %920 = vmatprep.mubr.msk.f32.mxu0 %vm1103_vm1, %v1102_v2  ;;  %v67_v2 = vld [vmem:[%s1478_s26] sm:$0xff]  ;;  %s1008_s26 = scalar_lea.vmem %s765_s25, 128 }
 0x12b   :  { %980 = vmatpush3.bf16.msra.mxu1 %v979_v23  ;;  %p1009_p0 = scmp.ne.s32.totalorder %s765_s25, %s1008_s26  ;;  %p1014_p2 = scmp.lt.s32.totalorder %s1008_s26, %s1008_s26 }
 0x12c   :  { %981 = vmatprep.subr.bf16.mxu1 %v1104_v8 }
 0x12d   :  { %p1015_p3 = por %p1014_p2, %p1013_p1 }
 0x12f   :  { %983 = vmatpush3.bf16.msra.mxu1 %v982_v26  ;;  %p1016_p4 = pnand %p1015_p3, %p1009_p0 }
 0x130   :  { %984 = vmatprep.subr.bf16.mxu1 %v1104_v8 }
 0x133   :  { %986 = vmatpush3.bf16.msra.mxu1 %v985_v29 }
 0x1f8   :  { %v346_v7 = vpop.f32.mrb[0].mxu1  ;;  %v431_v9 = vpop.f32.mrb[2].mxu0 }
 0x1f9   :  { %v347_v10 = vadd.f32 %v807_v5, %v346_v7  ;;  %v432_v11 = vadd.f32 %v809_v6, %v431_v9  ;;  %v891_v1 = vpop.f32.mrb[1].mxu1  ;;  %v910_v12 = vpop.f32.mrb[3].mxu0 }
 0x1fb   :  { %v435_v13 = vmul.f32 0.5, %v432_v11  ;;  %745 = vst.msk [vmem:[#allocation4] sm:$0xff] %vm513_vm4, %v347_v10  ;;  %746 = vst.msk [vmem:[#allocation6] sm:$0xff] %vm513_vm4, %v432_v11 }
 0x1fd   :  { %v436_v14 = vmul.f32 1.442695, %v435_v13 }
 0x1ff   :  { %1000 = vpow2.f32 %v436_v14 }
 0x209   :  { %v1001_v15 = vpop.eup %1000 }
 0x20a   :  { %v438_v16 = vmul.f32 %v1001_v15, %v67_v2 }
 0x20c   :  { %v439_v17 = vadd.f32 %v438_v16, %v347_v10 }
 0x20e   :  { %921 = vmatmul.mubr.msk.f32.vlgmr.msra.gmra.mrb[4].mxu0 %vm513_vm4, %v439_v17  ;;  %747 = vst.msk [vmem:[#allocation7] sm:$0xff] %vm513_vm4, %v439_v17 }
 0x2e1   :  { %v583_v30 = vpop.f32.mrb[4].mxu0 }
 0x2e2   :  { %v589_v31 = vsel %vm224_vm3, %v583_v30, 0.0  ;;  %v922_v32 = vpop.f32.mrb[5].mxu0 }
 0x2e3   :  { %v590_v33 = vrot.slane %v589_v31, 4 }
 0x2e5   :  { %v591_v34 = vadd.f32 %v590_v33, %v589_v31 }
 0x2e7   :  { %v592_v35 = vrot.slane %v591_v34, 2 }
 0x2e9   :  { %v593_v36 = vadd.f32 %v592_v35, %v591_v34 }
 0x2eb   :  { %v594_v37 = vrot.slane %v593_v36, 1 }
 0x2ed   :  { %v595_v8 = vadd.f32 %v594_v37, %v593_v36 }
 0x2ef   :  { %v596_v38 = vmul.f32 0.125, %v595_v8 }
 0x2f1   :  { %v597_v39 = vsub.f32 %v583_v30, %v596_v38 }
 0x2f3   :  { %v598_v40 = vmul.f32 %v597_v39, %v597_v39 }
 0x2f5   :  { %v599_v41 = vsel %vm224_vm3, %v598_v40, 0.0 }
 0x2f6   :  { %v600_v42 = vrot.slane %v599_v41, 4 }
 0x2f8   :  { %v601_v43 = vadd.f32 %v600_v42, %v599_v41 }
 0x2fa   :  { %v602_v44 = vrot.slane %v601_v43, 2 }
 0x2fc   :  { %v603_v45 = vadd.f32 %v602_v44, %v601_v43 }
 0x2fe   :  { %v604_v46 = vrot.slane %v603_v45, 1 }
 0x300   :  { %v605_v47 = vadd.f32 %v604_v46, %v603_v45 }
 0x302   :  { %v606_v48 = vmul.f32 0.125, %v605_v47 }
 0x304   :  { %v607_v49 = vadd.f32 1e-05, %v606_v48 }
 0x306   :  { %1002 = vrsqrt.f32 %v607_v49 }
 0x310   :  { %v1003_v50 = vpop.eup %1002 }
 0x311   :  { %v609_v52 = vmul.f32 %v1003_v50, %v597_v39 }
 0x313   :  { %v616_v54 = vmul.f32 %v813_v51, %v609_v52 }
 0x315   :  { %v623_v55 = vadd.f32 %v814_v53, %v616_v54 }
 0x317   :  { %v624_v56 = vmax.f32 %v623_v55, 0.0 }
 0x319   :  { %940 = vmatmul.mubr.msk.f32.vlgmr.msra.gmra.mrb[2].mxu1 %vm224_vm3, %v624_v56 }
 0x31a   :  { %1019 = shalt.err (!%p1016_p4)
}
 0x31b   :  { %s1020_s10 = scalar_lea.hbm %s1463_s19, 128 }
 0x31c   :  { %p1021_p5 = scmp.ne.s32.totalorder %s1463_s19, %s1020_s10  ;;  %p1024_p6 = scmp.lt.u32.totalorder %s1020_s10, %s1463_s19 }
 0x31e   :  { %p1026_p7 = pnand %p1024_p6, %p1021_p5 }
 0x320   :  { %1029 = shalt.err (!%p1026_p7)
}
 0x321   :  { %767 = dma.vmem_to_hbm [thread:$0]  %s765_s25, 128, %s1463_s19, [#allocation5]  }
 0x322   :  { %s1106_s29 = smov [#allocation6]   ;;  %s1107_s4 = smov [#allocation7]  }
 0x323   :  { %s774_s0 = sshll.u32 %s1106_s29, 4  ;;  %s784_s30 = sshll.u32 %s1107_s4, 4  ;;  %s775_s0 = int_to_ptr.vmem [resolvable:$true] %s774_s0  ;;  %s785_s30 = int_to_ptr.vmem [resolvable:$true] %s784_s30 }
 0x324   :  { %s1030_s5 = scalar_lea.vmem %s775_s0, 128  ;;  %p1035_p9 = scmp.lt.s32.totalorder %s775_s0, %s775_s0 }
 0x325   :  { %p1031_p8 = scmp.ne.s32.totalorder %s775_s0, %s1030_s5  ;;  %p1036_p10 = scmp.lt.s32.totalorder %s1030_s5, %s1030_s5 }
 0x327   :  { %p1037_p11 = por %p1036_p10, %p1035_p9 }
 0x329   :  { %p1038_p12 = pnand %p1037_p11, %p1031_p8 }
 0x32b   :  { %1041 = shalt.err (!%p1038_p12)
}
 0x32c   :  { %s1042_s23 = scalar_lea.hbm %s1464_s20, 128 }
 0x32d   :  { %p1043_p13 = scmp.ne.s32.totalorder %s1464_s20, %s1042_s23  ;;  %p1046_p0 = scmp.lt.u32.totalorder %s1042_s23, %s1464_s20 }
 0x32f   :  { %p1048_p1 = pnand %p1046_p0, %p1043_p13 }
 0x331   :  { %1051 = shalt.err (!%p1048_p1)
}
 0x332   :  { %777 = dma.vmem_to_hbm [thread:$0]  %s775_s0, 128, %s1464_s20, [#allocation5]  }
 0x333   :  { %s1052_s11 = scalar_lea.vmem %s785_s30, 128  ;;  %p1057_p3 = scmp.lt.s32.totalorder %s785_s30, %s785_s30 }
 0x334   :  { %p1053_p2 = scmp.ne.s32.totalorder %s785_s30, %s1052_s11  ;;  %p1058_p4 = scmp.lt.s32.totalorder %s1052_s11, %s1052_s11 }
 0x336   :  { %p1059_p5 = por %p1058_p4, %p1057_p3 }
 0x338   :  { %p1060_p6 = pnand %p1059_p5, %p1053_p2 }
 0x33a   :  { %1063 = shalt.err (!%p1060_p6)
}
 0x33b   :  { %s1064_s13 = scalar_lea.hbm %s1465_s21, 128 }
 0x33c   :  { %p1065_p7 = scmp.ne.s32.totalorder %s1465_s21, %s1064_s13  ;;  %p1068_p8 = scmp.lt.u32.totalorder %s1064_s13, %s1465_s21 }
 0x33e   :  { %p1070_p9 = pnand %p1068_p8, %p1065_p7 }
 0x340   :  { %1073 = shalt.err (!%p1070_p9)
}
 0x341   :  { %787 = dma.vmem_to_hbm [thread:$0]  %s785_s30, 128, %s1465_s21, [#allocation8]   ;;  %v816_v16 = vld [vmem:[%s1460_s16] ss:$0 sm:$0xff] }
 0x342   :  { %v817_v18 = vld [vmem:[%s1461_s17] ss:$0 sm:$0xff]  ;;  %s1108_s29 = smov [#allocation2]  }
 0x343   :  { %s754_s0 = sshll.u32 %s1108_s29, 4  ;;  %s755_s0 = int_to_ptr.vmem [resolvable:$true] %s754_s0 }
 0x344   :  { %s1074_s4 = scalar_lea.vmem %s755_s0, 128  ;;  %p1079_p11 = scmp.lt.s32.totalorder %s755_s0, %s755_s0 }
 0x345   :  { %p1075_p10 = scmp.ne.s32.totalorder %s755_s0, %s1074_s4  ;;  %p1080_p12 = scmp.lt.s32.totalorder %s1074_s4, %s1074_s4 }
 0x347   :  { %p1081_p13 = por %p1080_p12, %p1079_p11 }
 0x349   :  { %p1082_p0 = pnand %p1081_p13, %p1075_p10 }
 0x3ec   :  { %v702_v57 = vpop.f32.mrb[2].mxu1 }
 0x3ed   :  { %v708_v58 = vsel %vm148_vm2, %v702_v57, 0.0  ;;  %v941_v59 = vpop.f32.mrb[3].mxu1 }
 0x3ee   :  { %v709_v60 = vrot.slane %v708_v58, 4 }
 0x3f0   :  { %v710_v61 = vadd.f32 %v709_v60, %v708_v58 }
 0x3f2   :  { %v711_v62 = vrot.slane %v710_v61, 2 }
 0x3f4   :  { %v712_v63 = vadd.f32 %v711_v62, %v710_v61 }
 0x3f6   :  { %v713_v0 = vrot.slane %v712_v63, 1 }
 0x3f8   :  { %v714_v3 = vadd.f32 %v713_v0, %v712_v63 }
 0x3fa   :  { %v715_v4 = vmul.f32 0.125, %v714_v3 }
 0x3fc   :  { %v716_v5 = vsub.f32 %v702_v57, %v715_v4 }
 0x3fe   :  { %v717_v6 = vmul.f32 %v716_v5, %v716_v5 }
 0x400   :  { %v718_v7 = vsel %vm148_vm2, %v717_v6, 0.0 }
 0x401   :  { %v719_v9 = vrot.slane %v718_v7, 4 }
 0x403   :  { %v720_v10 = vadd.f32 %v719_v9, %v718_v7 }
 0x405   :  { %v721_v11 = vrot.slane %v720_v10, 2 }
 0x407   :  { %v722_v1 = vadd.f32 %v721_v11, %v720_v10 }
 0x409   :  { %v723_v12 = vrot.slane %v722_v1, 1 }
 0x40b   :  { %v724_v13 = vadd.f32 %v723_v12, %v722_v1 }
 0x40d   :  { %v725_v14 = vmul.f32 0.125, %v724_v13 }
 0x40f   :  { %v726_v2 = vadd.f32 1e-05, %v725_v14 }
 0x411   :  { %1004 = vrsqrt.f32 %v726_v2 }
 0x41b   :  { %v1005_v15 = vpop.eup %1004 }
 0x41c   :  { %v728_v17 = vmul.f32 %v1005_v15, %v716_v5 }
 0x41e   :  { %v735_v19 = vmul.f32 %v816_v16, %v728_v17 }
 0x420   :  { %v742_v20 = vadd.f32 %v817_v18, %v735_v19 }
 0x422   :  { %1006 = vtanh.f32 %v742_v20 }
 0x42c   :  { %v1007_v21 = vpop.eup %1006 }
 0x42d   :  { %744 = vst.msk [vmem:[#allocation2] sm:$0xff] %vm148_vm2, %v1007_v21 }
 0x42e   :  { %1085 = shalt.err (!%p1082_p0)
}
 0x42f   :  { %s1086_s17 = scalar_lea.hbm %s1462_s18, 128 }
 0x430   :  { %p1087_p1 = scmp.ne.s32.totalorder %s1462_s18, %s1086_s17  ;;  %p1090_p2 = scmp.lt.u32.totalorder %s1086_s17, %s1462_s18 }
 0x432   :  { %p1092_p3 = pnand %p1090_p2, %p1087_p1 }
 0x434   :  { %1095 = shalt.err (!%p1092_p3)
}
 0x435   :  { %757 = dma.vmem_to_hbm [thread:$0]  %s755_s0, 128, %s1462_s18, [#allocation3]  }
 0x436   :  { %1096 = dma.done.wait [#allocation3], 128  }
 0x437   :  { %1097 = vsyncadd [#allocation3], 4294967168 }
 0x438   :  { %1098 = dma.done.wait [#allocation5], 256  }
 0x439   :  { %1099 = vsyncadd [#allocation5], 4294967040 }
 0x43a   :  { %1100 = dma.done.wait [#allocation8], 128  }
 0x43b   :  { %1101 = vsyncadd [#allocation8], 4294967168 }
 0x43c   :  { %800 = vsyncpa [#allocation3], 1 }
 0x43d   :  { %801 = vsyncpa [#allocation5], 1 }
 0x43e   :  { %802 = vsyncpa [#allocation8], 1 }

</bundles_post_ra>
